<compile_context>
chip_gen: v6e
topology: v6e:2x2x1
jax: 0.10.0
libtpu: 0.0.40
codegen_flags: <defaults>
</compile_context>

<pallas_src>
import functools

import jax
import jax.numpy as jnp
from jax.experimental import pallas as pl
from jax.experimental.pallas import tpu as pltpu

LANES = 128
SUBLANES = 8
MAX_BLOCK_ROWS = 2048   # (2048, 128) f32 tile = 1 MiB
EPS = 1e-8


def _si_loss_kernel(pred_ref, gt_ref, sum_ref, sumsq_ref, *, valid_rows, need_mask):
    """Accumulate lane/sublane-wise partial sums of d and d*d.

    sum_ref / sumsq_ref are (8, 128) f32 outputs used as VMEM-resident
    accumulators (constant output block index across the 'arbitrary' grid axis).
    """
    i = pl.program_id(0)
    block_rows = pred_ref.shape[0]

    @pl.when(i == 0)
    def _():
        sum_ref[...] = jnp.zeros_like(sum_ref)
        sumsq_ref[...] = jnp.zeros_like(sumsq_ref)

    # Native-dtype stream from HBM; upcast in VMEM (not in HBM).
    pred = pred_ref[...].astype(jnp.float32)
    gt = gt_ref[...].astype(jnp.float32)

    if need_mask:
        # The last grid block may read past the array bound (unspecified data).
        # Neutralize those rows *before* the log so they contribute d == 0.
        row = i * block_rows + jax.lax.broadcasted_iota(
            jnp.int32, (block_rows, LANES), 0)
        valid = row < valid_rows
        pred = jnp.where(valid, pred, 1.0)
        gt = jnp.where(valid, gt, 1.0)

    d = jnp.log(pred + EPS) - jnp.log(gt + EPS)

    # Pure VPU accumulation: sum over the leading (vreg-group) axis; defer the
    # cross-lane/sublane reduction to the wrapper epilogue.
    d3 = d.reshape(block_rows // SUBLANES, SUBLANES, LANES)
    sum_ref[...] += jnp.sum(d3, axis=0)
    sumsq_ref[...] += jnp.sum(d3 * d3, axis=0)


def scale_invariant_loss(predicted, ground_truth):
    assert predicted.shape == ground_truth.shape
    n_elems = predicted.size

    # Flatten (free) and keep the native dtype.
    pred = jnp.ravel(predicted)
    gt = jnp.ravel(ground_truth)

    # Pad with 1.0 (=> d == 0) only when n is not a multiple of one (8, 128)
    # vreg; common tensor sizes take the copy-free path.
    tile = SUBLANES * LANES
    padded = pl.cdiv(n_elems, tile) * tile
    pad = padded - n_elems
    if pad:
        pred = jnp.pad(pred, (0, pad), constant_values=1.0)
        gt = jnp.pad(gt, (0, pad), constant_values=1.0)

    rows = padded // LANES                   # multiple of 8
    block_rows = min(MAX_BLOCK_ROWS, rows)   # multiple of 8, <= rows
    grid_rows = pl.cdiv(rows, block_rows)
    need_mask = (rows % block_rows) != 0     # only large, oddly sized inputs

    pred2d = pred.reshape(rows, LANES)
    gt2d = gt.reshape(rows, LANES)

    kernel = functools.partial(
        _si_loss_kernel, valid_rows=rows, need_mask=need_mask)

    sum_part, sumsq_part = pl.pallas_call(
        kernel,
        out_shape=(
            jax.ShapeDtypeStruct((SUBLANES, LANES), jnp.float32),
            jax.ShapeDtypeStruct((SUBLANES, LANES), jnp.float32),
        ),
        grid_spec=pltpu.PrefetchScalarGridSpec(
            num_scalar_prefetch=0,
            grid=(grid_rows,),
            in_specs=[
                pl.BlockSpec((block_rows, LANES), lambda i: (i, 0)),
                pl.BlockSpec((block_rows, LANES), lambda i: (i, 0)),
            ],
            out_specs=(
                pl.BlockSpec((SUBLANES, LANES), lambda i: (0, 0)),
                pl.BlockSpec((SUBLANES, LANES), lambda i: (0, 0)),
            ),
        ),
        compiler_params=pltpu.CompilerParams(
            dimension_semantics=("arbitrary",),
        ),
    )(pred2d, gt2d)

    # Tiny epilogue: one cross-lane/sublane reduce + scale-invariant combine.
    n = jnp.float32(n_elems)
    s = jnp.sum(sum_part)
    ss = jnp.sum(sumsq_part)
    return ss / n - (s * s) / (n * n)


def _reference_loss(predicted, ground_truth):
    p = predicted.astype(jnp.float32)
    g = ground_truth.astype(jnp.float32)
    d = jnp.log(p + EPS) - jnp.log(g + EPS)
    n = d.size
    return jnp.sum(d * d) / n - (jnp.sum(d) ** 2) / (n * n)


if __name__ == "__main__":
    key = jax.random.PRNGKey(0)
    k1, k2, k3, k4 = jax.random.split(key, 4)

    # NCHW, small shapes: batch=2, channels=4, spatial=16x16. Positive values
    # (depth-like), matching the log-based loss's domain.
    predicted = jax.random.uniform(k1, (2, 4, 16, 16), jnp.float32, 0.1, 10.0)
    ground_truth = jax.random.uniform(k2, (2, 4, 16, 16), jnp.float32, 0.1, 10.0)

    loss = jax.block_until_ready(scale_invariant_loss(predicted, ground_truth))
    ref = _reference_loss(predicted, ground_truth)
    assert jnp.allclose(loss, ref, rtol=1e-5, atol=1e-5), (loss, ref)

    # Ragged element count (945 elements) exercises the minimal-padding path.
    pred_r = jax.random.uniform(k3, (3, 5, 7, 9), jnp.float32, 0.1, 10.0)
    gt_r = jax.random.uniform(k4, (3, 5, 7, 9), jnp.float32, 0.1, 10.0)
    loss_r = jax.block_until_ready(scale_invariant_loss(pred_r, gt_r))
    ref_r = _reference_loss(pred_r, gt_r)
    assert jnp.allclose(loss_r, ref_r, rtol=1e-5, atol=1e-5), (loss_r, ref_r)

    print("KERNEL_OK")
</pallas_src>

<mosaic_0001>
module attributes {stable_mosaic.version = 11 : i64} {
  func.func @_si_loss_kernel(%arg0: i32, %arg1: memref<16x128xf32, #tpu.memory_space<vmem>>, %arg2: memref<16x128xf32, #tpu.memory_space<vmem>>, %arg3: memref<8x128xf32, #tpu.memory_space<vmem>>, %arg4: memref<8x128xf32, #tpu.memory_space<vmem>>) attributes {dimension_semantics = [#tpu.dimension_semantics<arbitrary>], iteration_bounds = array<i64: 1>, scalar_prefetch = 0 : i64, scratch_operands = 0 : i64, tpu.core_type = #tpu.core_type<tc>, window_params = [{transform_indices = @transform_0, window_bounds = array<i64: 16, 128>}, {transform_indices = @transform_1, window_bounds = array<i64: 16, 128>}, {pipeline_mode = #tpu.pipeline_mode<synchronous>, transform_indices = @transform_2, window_bounds = array<i64: 8, 128>}, {pipeline_mode = #tpu.pipeline_mode<synchronous>, transform_indices = @transform_3, window_bounds = array<i64: 8, 128>}]} {
    %c0_i32 = arith.constant 0 : i32
    %0 = arith.cmpi eq, %arg0, %c0_i32 : i32
    %1 = arith.extui %0 : i1 to i32
    %c0_i32_0 = arith.constant 0 : i32
    %2 = arith.cmpi ne, %1, %c0_i32_0 : i32
    scf.if %2 {
      %cst_15 = arith.constant 0.000000e+00 : f32
      %22 = vector.broadcast %cst_15 : f32 to vector<8x128xf32>
      %c0_16 = arith.constant 0 : index
      %c0_17 = arith.constant 0 : index
      %23 = vector.load %arg3[%c0_16, %c0_17] : memref<8x128xf32, #tpu.memory_space<vmem>>, vector<8x128xf32>
      tpu.vector_store %arg3[%c0_16, %c0_17], %22 {strides = array<i32>} : memref<8x128xf32, #tpu.memory_space<vmem>>, vector<8x128xf32>,
      %cst_18 = arith.constant 0.000000e+00 : f32
      %24 = vector.broadcast %cst_18 : f32 to vector<8x128xf32>
      %c0_19 = arith.constant 0 : index
      %c0_20 = arith.constant 0 : index
      %25 = vector.load %arg4[%c0_19, %c0_20] : memref<8x128xf32, #tpu.memory_space<vmem>>, vector<8x128xf32>
      tpu.vector_store %arg4[%c0_19, %c0_20], %24 {strides = array<i32>} : memref<8x128xf32, #tpu.memory_space<vmem>>, vector<8x128xf32>,
    } else {
    }
    %c0 = arith.constant 0 : index
    %c0_1 = arith.constant 0 : index
    %3 = vector.load %arg1[%c0, %c0_1] : memref<16x128xf32, #tpu.memory_space<vmem>>, vector<16x128xf32>
    %c0_2 = arith.constant 0 : index
    %c0_3 = arith.constant 0 : index
    %4 = vector.load %arg2[%c0_2, %c0_3] : memref<16x128xf32, #tpu.memory_space<vmem>>, vector<16x128xf32>
    %cst = arith.constant 9.99999993E-9 : f32
    %5 = vector.broadcast %cst : f32 to vector<16x128xf32>
    %6 = arith.addf %3, %5 : vector<16x128xf32>
    %7 = math.log %6 : vector<16x128xf32>
    %cst_4 = arith.constant 9.99999993E-9 : f32
    %8 = vector.broadcast %cst_4 : f32 to vector<16x128xf32>
    %9 = arith.addf %4, %8 : vector<16x128xf32>
    %10 = math.log %9 : vector<16x128xf32>
    %11 = arith.subf %7, %10 : vector<16x128xf32>
    %12 = vector.shape_cast %11 : vector<16x128xf32> to vector<2x8x128xf32>
    %c0_5 = arith.constant 0 : index
    %c0_6 = arith.constant 0 : index
    %13 = vector.load %arg3[%c0_5, %c0_6] : memref<8x128xf32, #tpu.memory_space<vmem>>, vector<8x128xf32>
    %cst_7 = arith.constant dense<0.000000e+00> : vector<8x128xf32>
    %14 = vector.multi_reduction <add>, %12, %cst_7 [0] : vector<2x8x128xf32> to vector<8x128xf32>
    %15 = arith.addf %13, %14 : vector<8x128xf32>
    %c0_8 = arith.constant 0 : index
    %c0_9 = arith.constant 0 : index
    %16 = vector.load %arg3[%c0_8, %c0_9] : memref<8x128xf32, #tpu.memory_space<vmem>>, vector<8x128xf32>
    tpu.vector_store %arg3[%c0_8, %c0_9], %15 {strides = array<i32>} : memref<8x128xf32, #tpu.memory_space<vmem>>, vector<8x128xf32>,
    %c0_10 = arith.constant 0 : index
    %c0_11 = arith.constant 0 : index
    %17 = vector.load %arg4[%c0_10, %c0_11] : memref<8x128xf32, #tpu.memory_space<vmem>>, vector<8x128xf32>
    %18 = arith.mulf %12, %12 : vector<2x8x128xf32>
    %cst_12 = arith.constant dense<0.000000e+00> : vector<8x128xf32>
    %19 = vector.multi_reduction <add>, %18, %cst_12 [0] : vector<2x8x128xf32> to vector<8x128xf32>
    %20 = arith.addf %17, %19 : vector<8x128xf32>
    %c0_13 = arith.constant 0 : index
    %c0_14 = arith.constant 0 : index
    %21 = vector.load %arg4[%c0_13, %c0_14] : memref<8x128xf32, #tpu.memory_space<vmem>>, vector<8x128xf32>
    tpu.vector_store %arg4[%c0_13, %c0_14], %20 {strides = array<i32>} : memref<8x128xf32, #tpu.memory_space<vmem>>, vector<8x128xf32>,
    return
  }
  func.func @transform_0(%arg0: i32) -> (i32, i32) {
    %c0_i32 = arith.constant 0 : i32
    %c0_i32_0 = arith.constant 0 : i32
    return %arg0, %c0_i32 : i32, i32
  }
  func.func @transform_1(%arg0: i32) -> (i32, i32) {
    %c0_i32 = arith.constant 0 : i32
    %c0_i32_0 = arith.constant 0 : i32
    return %arg0, %c0_i32 : i32, i32
  }
  func.func @transform_2(%arg0: i32) -> (i32, i32) {
    %c0_i32 = arith.constant 0 : i32
    %c0_i32_0 = arith.constant 0 : i32
    %c0_i32_1 = arith.constant 0 : i32
    return %c0_i32, %c0_i32_0 : i32, i32
  }
  func.func @transform_3(%arg0: i32) -> (i32, i32) {
    %c0_i32 = arith.constant 0 : i32
    %c0_i32_0 = arith.constant 0 : i32
    %c0_i32_1 = arith.constant 0 : i32
    return %c0_i32, %c0_i32_0 : i32, i32
  }
}

</mosaic_0001>

<bundles_post_ra>
// kernel: tpu_custom_call.1
= control target key start
LH: loop header
LB: loop body
LE: loop exit
PB: predicated region body
PF: predicated region fallthrough
CT: control target
= control target key end

     0   :  { %9 = vsyncpa [#allocation3], 0  ;;  %s248_s0 = inlined_call_operand.hbm [shape: f32[16,128], index: 0, kind: input, shape index: {}]   ;;  %s249_s1 = inlined_call_operand.hbm [shape: f32[16,128], index: 1, kind: input, shape index: {}]   ;;  %s250_s2 = inlined_call_operand.hbm [shape: f32[8,128], index: 2, kind: output, shape index: {0}]   ;;  %s251_s3 = inlined_call_operand.hbm [shape: f32[8,128], index: 3, kind: output, shape index: {1}]  }
   0x1   :  { %10 = vsyncpa [#allocation6], 0 }
   0x2   :  { %11 = vsyncpa [#allocation4], 0 }
   0x3   :  { %12 = vsyncpa [#allocation9], 0  ;;  %s210_s12 = smov [#allocation2]  }
   0x4   :  { %s18_s13 = sshll.u32 %s210_s12, 4  ;;  %s19_s13 = int_to_ptr.vmem [resolvable:$true] %s18_s13 }
   0x5   :  { %s130_s14 = scalar_lea.vmem %s19_s13, 256  ;;  %p135_p1 = scmp.lt.s32.totalorder %s19_s13, %s19_s13 }
   0x6   :  { %p131_p0 = scmp.ne.s32.totalorder %s19_s13, %s130_s14  ;;  %p136_p2 = scmp.lt.s32.totalorder %s130_s14, %s130_s14 }
   0x8   :  { %p137_p3 = por %p136_p2, %p135_p1 }
   0xa   :  { %p138_p4 = pnand %p137_p3, %p131_p0 }
   0xc   :  { %141 = shalt.err (!%p138_p4)
}
   0xd   :  { %s211_s15 = smov 128   ;;  %s212_s16 = smov 8  }
   0xe   :  { %24 = dma.hbm_to_vmem [thread:$0]  %s248_s0, 256, %s19_s13, [#allocation3], %s211_s15, %s211_s15, %s212_s16  }
   0xf   :  { %s213_s19 = smov [#allocation5]  }
  0x10   :  { %s30_s20 = sshll.u32 %s213_s19, 4  ;;  %s31_s20 = int_to_ptr.vmem [resolvable:$true] %s30_s20 }
  0x11   :  { %s150_s21 = scalar_lea.vmem %s31_s20, 256  ;;  %p155_p6 = scmp.lt.s32.totalorder %s31_s20, %s31_s20 }
  0x12   :  { %p151_p5 = scmp.ne.s32.totalorder %s31_s20, %s150_s21  ;;  %p156_p7 = scmp.lt.s32.totalorder %s150_s21, %s150_s21 }
  0x14   :  { %p157_p8 = por %p156_p7, %p155_p6 }
  0x16   :  { %p158_p9 = pnand %p157_p8, %p151_p5 }
  0x18   :  { %161 = shalt.err (!%p158_p9)
}
  0x19   :  { %36 = dma.hbm_to_vmem [thread:$0]  %s249_s1, 256, %s31_s20, [#allocation6], %s211_s15, %s211_s15, %s212_s16  }
  0x1a   :  { %202 = dma.done.wait [#allocation3], 256  }
  0x1b   :  { %203 = vsyncadd [#allocation3], 4294967040 }
  0x1c   :  { %204 = dma.done.wait [#allocation6], 256  }
  0x1d   :  { %205 = vsyncadd [#allocation6], 4294967040  ;;  %v49_v0 = vld [vmem:[#allocation2] sm:$0xff]  ;;  %v50_v1 = vld [vmem:[#allocation2 + $0x8] sm:$0xff]  ;;  %s214_s0 = smov [#allocation7]   ;;  %s215_s24 = smov [#allocation8]  }
  0x1e   :  { %v51_v2 = vld [vmem:[#allocation5] sm:$0xff]  ;;  %v52_v3 = vld [vmem:[#allocation5 + $0x8] sm:$0xff]  ;;  %v53_v4 = vadd.f32 1e-08, %v49_v0  ;;  %v54_v5 = vadd.f32 1e-08, %v50_v1 }
  0x1f   :  { %v59_v6 = vadd.f32 1e-08, %v51_v2  ;;  %v60_v7 = vadd.f32 1e-08, %v52_v3  ;;  %s83_s1 = sshll.u32 %s214_s0, 4  ;;  %s93_s25 = sshll.u32 %s215_s24, 4  ;;  %s84_s1 = int_to_ptr.vmem [resolvable:$true] %s83_s1  ;;  %s94_s25 = int_to_ptr.vmem [resolvable:$true] %s93_s25 }
  0x20   :  { %114 = vlog2.f32 %v53_v4  ;;  %s162_s26 = scalar_lea.vmem %s84_s1, 128  ;;  %p167_p11 = scmp.lt.s32.totalorder %s84_s1, %s84_s1 }
  0x21   :  { %116 = vlog2.f32 %v54_v5  ;;  %p163_p10 = scmp.ne.s32.totalorder %s84_s1, %s162_s26  ;;  %p168_p12 = scmp.lt.s32.totalorder %s162_s26, %s162_s26 }
  0x22   :  { %118 = vlog2.f32 %v59_v6 }
  0x23   :  { %120 = vlog2.f32 %v60_v7  ;;  %p169_p13 = por %p168_p12, %p167_p11 }
  0x25   :  { %p170_p0 = pnand %p169_p13, %p163_p10 }
  0x2d   :  { %v115_v8 = vpop.eup %114 }
  0x2e   :  { %v117_v9 = vpop.eup %116  ;;  %v56_v10 = vmul.f32 0.6931472, %v115_v8 }
  0x2f   :  { %v119_v11 = vpop.eup %118  ;;  %v58_v12 = vmul.f32 0.6931472, %v117_v9 }
  0x30   :  { %v121_v13 = vpop.eup %120  ;;  %v62_v14 = vmul.f32 0.6931472, %v119_v11 }
  0x31   :  { %v64_v15 = vmul.f32 0.6931472, %v121_v13 }
  0x32   :  { %v65_v16 = vsub.f32 %v56_v10, %v62_v14 }
  0x33   :  { %v66_v17 = vsub.f32 %v58_v12, %v64_v15 }
  0x34   :  { %v72_v18 = vmul.f32 %v65_v16, %v65_v16 }
  0x35   :  { %v68_v19 = vadd.f32 %v66_v17, %v65_v16  ;;  %v73_v20 = vmul.f32 %v66_v17, %v66_v17 }
  0x37   :  { %v74_v21 = vadd.f32 %v73_v20, %v72_v18  ;;  %70 = vst [vmem:[#allocation7] sm:$0xff] %v68_v19 }
  0x38   :  { %173 = shalt.err (!%p170_p0)
}
  0x39   :  { %86 = dma.vmem_to_hbm [thread:$0]  %s84_s1, 128, %s250_s2, [#allocation4]   ;;  %76 = vst [vmem:[#allocation8] sm:$0xff] %v74_v21 }
  0x3a   :  { %s182_s29 = scalar_lea.vmem %s94_s25, 128  ;;  %p187_p2 = scmp.lt.s32.totalorder %s94_s25, %s94_s25 }
  0x3b   :  { %p183_p1 = scmp.ne.s32.totalorder %s94_s25, %s182_s29  ;;  %p188_p3 = scmp.lt.s32.totalorder %s182_s29, %s182_s29 }
  0x3d   :  { %p189_p4 = por %p188_p3, %p187_p2 }
  0x3f   :  { %p190_p5 = pnand %p189_p4, %p183_p1 }
  0x41   :  { %193 = shalt.err (!%p190_p5)
}
  0x42   :  { %96 = dma.vmem_to_hbm [thread:$0]  %s94_s25, 128, %s251_s3, [#allocation9]  }
  0x43   :  { %206 = dma.done.wait [#allocation4], 128  }
  0x44   :  { %207 = vsyncadd [#allocation4], 4294967168 }
  0x45   :  { %208 = dma.done.wait [#allocation9], 128  }
  0x46   :  { %209 = vsyncadd [#allocation9], 4294967168 }
  0x47   :  { %103 = vsyncpa [#allocation3], 1 }
  0x48   :  { %104 = vsyncpa [#allocation6], 1 }
  0x49   :  { %105 = vsyncpa [#allocation4], 1 }
  0x4a   :  { %106 = vsyncpa [#allocation9], 1 }

</bundles_post_ra>
